<compile_context>
chip_gen: v7x
topology: tpu7x:2x2x1
jax: 0.10.0
libtpu: 0.0.40
codegen_flags: <defaults>
</compile_context>

<pallas_src>
import functools

import jax
import jax.numpy as jnp
import numpy as np
from jax import lax
from jax.experimental import pallas as pl
from jax.experimental.pallas import tpu as pltpu


def _round_up(x: int, m: int) -> int:
    return ((x + m - 1) // m) * m


def _vmem_capacity_bytes() -> int:
    """Best-effort physical VMEM query; conservative (v7x 64 MiB) fallback."""
    try:
        info = pltpu.get_tpu_info()
        for attr in ("vmem_capacity_bytes", "vmem_bytes", "vmem_size_bytes"):
            v = getattr(info, attr, None)
            if v:
                return int(v)
    except Exception:
        pass
    return 64 * 1024 * 1024


def _pick_tile(dim: int, cap: int, base: int, max_waste: float = 0.125) -> int:
    """Largest tile <= cap (multiple of base) whose padded extent wastes <= max_waste."""
    cap = max(base, (cap // base) * base)
    if dim <= cap:
        return _round_up(dim, base)
    for t in range(cap, base - 1, -base):
        padded = pl.cdiv(dim, t) * t
        if (padded - dim) <= max_waste * dim:
            return t
    return base


# --------------------------- kernels ---------------------------


def _fc_small_kernel(x_ref, w_ref, b_ref, o_ref, *, weight_gain, bias_gain):
    # Whole problem in one block: no K loop, no accumulator scratch.
    acc = lax.dot_general(
        x_ref[...], w_ref[...],
        dimension_numbers=(((1,), (1,)), ((), ())),   # contract K of x with K of w[N,K]
        preferred_element_type=jnp.float32,
    )
    out = acc * jnp.float32(weight_gain) + b_ref[...] * jnp.float32(bias_gain)
    o_ref[...] = out.astype(o_ref.dtype)


def _fc_tiled_kernel(x_ref, w_ref, b_ref, o_ref, acc_ref, *, weight_gain, bias_gain):
    k = pl.program_id(2)

    @pl.when(k == 0)
    def _():
        acc_ref[...] = jnp.zeros_like(acc_ref)

    # MXU matmul on raw (unscaled) operands; weight tile is [tn, tk] (no transpose needed).
    acc_ref[...] += lax.dot_general(
        x_ref[...], w_ref[...],
        dimension_numbers=(((1,), (1,)), ((), ())),
        preferred_element_type=jnp.float32,
    )

    @pl.when(k == pl.num_programs(2) - 1)
    def _():
        acc = acc_ref[...] * jnp.float32(weight_gain)
        b = b_ref[...] * jnp.float32(bias_gain)      # [1, tn], f32
        o_ref[...] = (acc + b).astype(o_ref.dtype)


# --------------------------- wrapper ---------------------------


def fully_connected_layer(x, weight, bias, *, lr_multiplier=1.0):
    """Forward pass of FullyConnectedLayer (activation='linear', bias=True).

    x:      [M, in_features]
    weight: [out_features, in_features]   (raw parameter, pre-gain)
    bias:   [out_features]                (raw parameter, pre-gain)
    """
    M, K = x.shape
    N, K2 = weight.shape
    assert K == K2, (K, K2)
    weight_gain = float(lr_multiplier) / float(np.sqrt(K))
    bias_gain = float(lr_multiplier)

    w = weight.astype(x.dtype)                       # [N, K]; stays in its HBM layout
    b_f32 = bias.astype(jnp.float32).reshape(1, N)   # bias kept in f32 end-to-end

    itemsize = jnp.dtype(x.dtype).itemsize
    vmem_cap = _vmem_capacity_bytes()
    vmem_limit = int(max(32 * 1024 * 1024,
                         min(vmem_cap - 12 * 1024 * 1024, 100 * 1024 * 1024)))
    budget = vmem_limit - 6 * 1024 * 1024            # headroom for compiler scratch

    # ---- fast path: whole problem in a single block (no padding, no K grid) ----
    small_bytes = (M * K + N * K) * itemsize + N * 4 + M * N * (itemsize + 4)
    if small_bytes <= 8 * 1024 * 1024:
        kernel = functools.partial(
            _fc_small_kernel, weight_gain=weight_gain, bias_gain=bias_gain
        )
        return pl.pallas_call(
            kernel,
            out_shape=jax.ShapeDtypeStruct((M, N), x.dtype),
            grid_spec=pltpu.PrefetchScalarGridSpec(
                num_scalar_prefetch=0,
                grid=(1,),
                in_specs=[
                    pl.BlockSpec((M, K), lambda i: (0, 0)),   # full x
                    pl.BlockSpec((N, K), lambda i: (0, 0)),   # full weight [N, K]
                    pl.BlockSpec((1, N), lambda i: (0, 0)),   # full bias (f32)
                ],
                out_specs=pl.BlockSpec((M, N), lambda i: (0, 0)),
            ),
            compiler_params=pltpu.CompilerParams(
                dimension_semantics=("arbitrary",),
                vmem_limit_bytes=vmem_limit,
            ),
            cost_estimate=pl.CostEstimate(
                flops=2 * M * N * K,
                transcendentals=0,
                bytes_accessed=(M * K + N * K + M * N) * itemsize + N * 4,
            ),
        )(x, w, b_f32)

    # ---- tiled path: padding-aware tiles, chip-aware VMEM budget ----
    base_m, base_n, base_k = 8, 128, 128
    if budget >= 80 * 1024 * 1024:
        cap_m, cap_n, cap_k = 1024, 2048, 1024       # 128 MiB VMEM chips (v5e / v6e)
    else:
        cap_m, cap_n, cap_k = 512, 1024, 1024        # 64 MiB VMEM chips (v7x)

    tm = _pick_tile(M, cap_m, base_m)
    tn = _pick_tile(N, cap_n, base_n)                # lane-dense output (multiple of 128)
    tk = _pick_tile(K, cap_k, base_k)

    def footprint(tm_, tn_, tk_):
        return (2 * (tm_ * tk_ + tn_ * tk_) * itemsize   # x / w tiles, double-buffered
                + 2 * tn_ * 4                            # bias tile (f32), double-buffered
                + 2 * tm_ * tn_ * itemsize                # output tile, double-buffered
                + tm_ * tn_ * 4)                          # f32 accumulator scratch

    while footprint(tm, tn, tk) > budget:
        if tk > base_k and tk >= max(tm, tn):
            tk = max(base_k, tk // 2)
        elif tn > base_n and tn >= tm:
            tn = max(base_n, tn // 2)
        elif tm > base_m:
            tm = max(base_m, tm // 2)
        else:
            break

    # Megacore guard (v7x has 2 TensorCores sharing the parallel grid axes):
    # make sure at least one parallel axis has >= 2 blocks.
    if _round_up(M, tm) // tm == 1 and _round_up(N, tn) // tn == 1:
        if _round_up(N, base_n) >= 2 * base_n:
            tn = _round_up(pl.cdiv(N, 2), base_n)
        elif _round_up(M, base_m) >= 2 * base_m:
            tm = _round_up(pl.cdiv(M, 2), base_m)

    Mp, Np, Kp = _round_up(M, tm), _round_up(N, tn), _round_up(K, tk)

    x_p = x if (Mp, Kp) == (M, K) else jnp.pad(x, ((0, Mp - M), (0, Kp - K)))
    w_p = w if (Np, Kp) == (N, K) else jnp.pad(w, ((0, Np - N), (0, Kp - K)))
    b_p = b_f32 if Np == N else jnp.pad(b_f32, ((0, 0), (0, Np - N)))

    grid = (Mp // tm, Np // tn, Kp // tk)

    kernel = functools.partial(
        _fc_tiled_kernel, weight_gain=weight_gain, bias_gain=bias_gain
    )

    # bytes_accessed accounts for tiled re-reads: x read grid_n times, w read grid_m times.
    cost = pl.CostEstimate(
        flops=2 * M * N * K,
        transcendentals=0,
        bytes_accessed=(M * K * grid[1] + K * N * grid[0] + M * N) * itemsize + N * 4,
    )

    out_p = pl.pallas_call(
        kernel,
        out_shape=jax.ShapeDtypeStruct((Mp, Np), x.dtype),
        grid_spec=pltpu.PrefetchScalarGridSpec(
            num_scalar_prefetch=0,
            grid=grid,
            in_specs=[
                pl.BlockSpec((tm, tk), lambda i, j, k: (i, k)),   # x tile
                pl.BlockSpec((tn, tk), lambda i, j, k: (j, k)),   # weight [N,K] tile
                pl.BlockSpec((1, tn), lambda i, j, k: (0, j)),    # bias tile (f32)
            ],
            out_specs=pl.BlockSpec((tm, tn), lambda i, j, k: (i, j)),
            scratch_shapes=[pltpu.VMEM((tm, tn), jnp.float32)],
        ),
        compiler_params=pltpu.CompilerParams(
            dimension_semantics=("parallel", "parallel", "arbitrary"),
            vmem_limit_bytes=vmem_limit,
        ),
        cost_estimate=cost,
    )(x_p, w_p, b_p)

    if (Mp, Np) != (M, N):
        out_p = out_p[:M, :N]
    return out_p


if __name__ == "__main__":
    # Small shapes consistent with the module's forward: x [batch, in_features].
    M, IN_FEATURES, OUT_FEATURES = 16, 32, 64
    LR_MULTIPLIER = 2.0
    BIAS_INIT = 0.5

    key = jax.random.PRNGKey(0)
    kx, kw = jax.random.split(key)

    x = jax.random.normal(kx, (M, IN_FEATURES), dtype=jnp.float32)
    # Parameter init mirrors torch: weight = randn([out, in]) / lr_multiplier,
    # bias = full([out], bias_init).
    weight = jax.random.normal(
        kw, (OUT_FEATURES, IN_FEATURES), dtype=jnp.float32
    ) / LR_MULTIPLIER
    bias = jnp.full((OUT_FEATURES,), np.float32(BIAS_INIT), dtype=jnp.float32)

    out = fully_connected_layer(x, weight, bias, lr_multiplier=LR_MULTIPLIER)
    out = jax.block_until_ready(out)

    # Reference check in plain JAX (same math as torch.addmm(b, x, w.t())).
    weight_gain = LR_MULTIPLIER / np.sqrt(IN_FEATURES)
    ref = x @ (weight * weight_gain).T + bias * LR_MULTIPLIER
    np.testing.assert_allclose(np.asarray(out), np.asarray(ref), rtol=1e-5, atol=1e-5)

    # Exercise the tiled path too (ragged shapes, K reduction over several tiles).
    M2, K2, N2 = 513, 1536, 771
    k1, k2 = jax.random.split(kx)
    x2 = jax.random.normal(k1, (M2, K2), dtype=jnp.float32)
    w2 = jax.random.normal(k2, (N2, K2), dtype=jnp.float32) / LR_MULTIPLIER
    b2 = jnp.full((N2,), np.float32(BIAS_INIT), dtype=jnp.float32)
    out2 = jax.block_until_ready(
        fully_connected_layer(x2, w2, b2, lr_multiplier=LR_MULTIPLIER)
    )
    ref2 = x2 @ (w2 * (LR_MULTIPLIER / np.sqrt(K2))).T + b2 * LR_MULTIPLIER
    np.testing.assert_allclose(np.asarray(out2), np.asarray(ref2), rtol=2e-4, atol=2e-4)

    print("KERNEL_OK")
</pallas_src>

<mosaic_0001>
module attributes {stable_mosaic.version = 11 : i64} {
  func.func @_fc_small_kernel(%arg0: i32, %arg1: memref<16x32xf32, #tpu.memory_space<vmem>>, %arg2: memref<64x32xf32, #tpu.memory_space<vmem>>, %arg3: memref<1x64xf32, #tpu.memory_space<vmem>>, %arg4: memref<16x64xf32, #tpu.memory_space<vmem>>) attributes {dimension_semantics = [#tpu.dimension_semantics<arbitrary>], iteration_bounds = array<i64: 1>, scalar_prefetch = 0 : i64, scratch_operands = 0 : i64, tpu.core_type = #tpu.core_type<tc>, window_params = [{pipeline_mode = #tpu.pipeline_mode<synchronous>, transform_indices = @transform_0, window_bounds = array<i64: 16, 32>}, {pipeline_mode = #tpu.pipeline_mode<synchronous>, transform_indices = @transform_1, window_bounds = array<i64: 64, 32>}, {pipeline_mode = #tpu.pipeline_mode<synchronous>, transform_indices = @transform_2, window_bounds = array<i64: 1, 64>}, {pipeline_mode = #tpu.pipeline_mode<synchronous>, transform_indices = @transform_3, window_bounds = array<i64: 16, 64>}]} {
    %c0 = arith.constant 0 : index
    %c0_0 = arith.constant 0 : index
    %0 = vector.load %arg1[%c0, %c0_0] : memref<16x32xf32, #tpu.memory_space<vmem>>, vector<16x32xf32>
    %c0_1 = arith.constant 0 : index
    %c0_2 = arith.constant 0 : index
    %1 = vector.load %arg2[%c0_1, %c0_2] : memref<64x32xf32, #tpu.memory_space<vmem>>, vector<64x32xf32>
    %cst = arith.constant dense<0.000000e+00> : vector<16x64xf32>
    %2 = tpu.matmul %0, %1, %cst {dimension_numbers = #tpu.dot_dimension_numbers<[1], [1], [0], [0], [0, 0, 1, 0], [], []>} : vector<16x32xf32>, vector<64x32xf32>, vector<16x64xf32> -> vector<16x64xf32>
    %cst_3 = arith.constant 0.353553385 : f32
    %3 = vector.broadcast %cst_3 : f32 to vector<16x64xf32>
    %4 = arith.mulf %2, %3 : vector<16x64xf32>
    %c0_4 = arith.constant 0 : index
    %c0_5 = arith.constant 0 : index
    %5 = vector.load %arg3[%c0_4, %c0_5] : memref<1x64xf32, #tpu.memory_space<vmem>>, vector<1x64xf32>
    %cst_6 = arith.constant 2.000000e+00 : f32
    %6 = vector.broadcast %cst_6 : f32 to vector<1x64xf32>
    %7 = arith.mulf %5, %6 : vector<1x64xf32>
    %8 = vector.broadcast %7 : vector<1x64xf32> to vector<16x64xf32>
    %9 = arith.addf %4, %8 : vector<16x64xf32>
    %c0_7 = arith.constant 0 : index
    %c0_8 = arith.constant 0 : index
    %10 = vector.load %arg4[%c0_7, %c0_8] : memref<16x64xf32, #tpu.memory_space<vmem>>, vector<16x64xf32>
    tpu.vector_store %arg4[%c0_7, %c0_8], %9 {strides = array<i32>} : memref<16x64xf32, #tpu.memory_space<vmem>>, vector<16x64xf32>,
    return
  }
  func.func @transform_0(%arg0: i32) -> (i32, i32) {
    %c0_i32 = arith.constant 0 : i32
    %c0_i32_0 = arith.constant 0 : i32
    %c0_i32_1 = arith.constant 0 : i32
    return %c0_i32, %c0_i32_0 : i32, i32
  }
  func.func @transform_1(%arg0: i32) -> (i32, i32) {
    %c0_i32 = arith.constant 0 : i32
    %c0_i32_0 = arith.constant 0 : i32
    %c0_i32_1 = arith.constant 0 : i32
    return %c0_i32, %c0_i32_0 : i32, i32
  }
  func.func @transform_2(%arg0: i32) -> (i32, i32) {
    %c0_i32 = arith.constant 0 : i32
    %c0_i32_0 = arith.constant 0 : i32
    %c0_i32_1 = arith.constant 0 : i32
    return %c0_i32, %c0_i32_0 : i32, i32
  }
  func.func @transform_3(%arg0: i32) -> (i32, i32) {
    %c0_i32 = arith.constant 0 : i32
    %c0_i32_0 = arith.constant 0 : i32
    %c0_i32_1 = arith.constant 0 : i32
    return %c0_i32, %c0_i32_0 : i32, i32
  }
}

</mosaic_0001>

<bundles_post_ra>
// kernel: tpu_custom_call.1
= control target key start
LH: loop header
LB: loop body
LE: loop exit
PB: predicated region body
PF: predicated region fallthrough
CT: control target
= control target key end

     0   :  { %vm25_vm0 = vcmask 261120   ;;  %s344_s0 = inlined_call_operand.vmem [shape: f32[16,32], index: 0, kind: input, shape index: {}]   ;;  %s345_s1 = inlined_call_operand.vmem [shape: f32[64,32], index: 1, kind: input, shape index: {}]   ;;  %s346_s2 = inlined_call_operand.vmem [shape: f32[1,64], index: 2, kind: input, shape index: {}]   ;;  %s347_s3 = inlined_call_operand.hbm [shape: f32[16,64], index: 3, kind: output, shape index: {}]  }
   0x1   :  { %v17_v0 = vld [vmem:[%s345_s1] sm:$0xff]  ;;  %v18_v1 = vld [vmem:[%s345_s1 + $0x8] sm:$0xff]  ;;  %v19_v2 = vld [vmem:[%s345_s1 + $0x10] sm:$0xff] }
   0x2   :  { %v201_v3 = vpack.c.bf16 %v18_v1, %v17_v0  ;;  %vm286_vm1 = vmpackc.low %vm25_vm0, %vm25_vm0  ;;  %v20_v5 = vld [vmem:[%s345_s1 + $0x18] sm:$0xff]  ;;  %v15_v7 = vld [vmem:[%s344_s0] sm:$0xff] }
   0x3   :  { %v207_v6 = vpack.c.bf16 %v20_v5, %v19_v2 }
   0x4   :  { %203 = vmatprep.subr.msk.bf16.mxu0 %vm286_vm1, %v201_v3 }
   0x5   :  { %8 = vsyncpa [#allocation3], 0  ;;  %206 = vmatpush3.bf16.xpose.msk.msra.mxu0 %vm286_vm1, %v201_v3  ;;  %198 = vmatprep.mubr.msk.f32.mxu0 %vm25_vm0, %v15_v7  ;;  %v21_v8 = vld [vmem:[%s345_s1 + $0x20] sm:$0xff]  ;;  %v22_v9 = vld [vmem:[%s345_s1 + $0x28] sm:$0xff]  ;;  %v136_v15 = vlaneseq  ;;  %s252_s6 = smov [#allocation2]   ;;  %vm143_vm2 = vcmask 523264  }
   0x6   :  { %209 = vmatprep.subr.msk.bf16.mxu0 %vm286_vm1, %v207_v6  ;;  %v213_v10 = vpack.c.bf16 %v22_v9, %v21_v8  ;;  %v23_v11 = vld [vmem:[%s345_s1 + $0x30] sm:$0xff]  ;;  %v24_v12 = vld [vmem:[%s345_s1 + $0x38] sm:$0xff]  ;;  %v16_v14 = vld [vmem:[%s344_s0 + $0x8] sm:$0xff]  ;;  %s151_s7 = sshll.u32 %s252_s6, 4  ;;  %s152_s7 = int_to_ptr.vmem [resolvable:$true] %s151_s7 }
   0x7   :  { %v219_v13 = vpack.c.bf16 %v24_v12, %v23_v11  ;;  %v137_v16 = vshrl.u32 %v136_v15, 7  ;;  %v133_v17 = vld [vmem:[%s346_s2] sm:$0x1]  ;;  %s228_s0 = scalar_lea.vmem %s152_s7, 256  ;;  %p233_p1 = scmp.lt.s32.totalorder %s152_s7, %s152_s7 }
   0x8   :  { %v134_v18 = vmul.f32 2.0, %v133_v17  ;;  %p229_p0 = scmp.ne.s32.totalorder %s152_s7, %s228_s0  ;;  %p234_p2 = scmp.lt.s32.totalorder %s228_s0, %s228_s0 }
   0x9   :  { %v138_v19 = vsub.s32 0, %v137_v16 }
   0xa   :  { %p235_p3 = por %p234_p2, %p233_p1 }
   0xb   :  { %v139_v20 = vrot.slane %v134_v18, %v138_v19 }
   0xc   :  { %p236_p4 = pnand %p235_p3, %p229_p0 }
   0xd   :  { %212 = vmatpush3.bf16.xpose.msk.msra.mxu0 %vm286_vm1, %v207_v6 }
   0xe   :  { %215 = vmatprep.subr.msk.bf16.mxu0 %vm286_vm1, %v213_v10 }
  0x15   :  { %218 = vmatpush3.bf16.xpose.msk.msra.mxu0 %vm286_vm1, %v213_v10 }
  0x16   :  { %221 = vmatprep.subr.msk.bf16.mxu0 %vm286_vm1, %v219_v13 }
  0x1d   :  { %224 = vmatpush3.bf16.xpose.msk.msra.mxu0 %vm286_vm1, %v219_v13 }
  0x24   :  { %199 = vmatmul.mubr.msk.f32.vlgmr.msra.gmra.mrb[0].mxu0 %vm25_vm0, %v16_v14 }
  0xf7   :  { %v200_v21 = vpop.f32.mrb[0].mxu0 }
  0xf8   :  { %v132_v22 = vmul.f32 0.35355338, %v200_v21  ;;  %v122_v23 = vpop.f32.mrb[1].mxu0 }
  0xf9   :  { %v131_v24 = vmul.f32 0.35355338, %v122_v23 }
  0xfa   :  { %v142_v25 = vadd.f32 %v139_v20, %v132_v22 }
  0xfb   :  { %v141_v26 = vadd.f32 %v139_v20, %v131_v24 }
  0xfc   :  { %145 = vst.msk [vmem:[#allocation2 + $0x8] sm:$0xff] %vm143_vm2, %v142_v25 }
  0xfd   :  { %144 = vst.msk [vmem:[#allocation2] sm:$0xff] %vm143_vm2, %v141_v26 }
  0xfe   :  { %239 = shalt.err (!%p236_p4)
}
  0xff   :  { %s240_s9 = scalar_lea.hbm %s347_s3, 256 }
 0x100   :  { %p241_p5 = scmp.ne.s32.totalorder %s347_s3, %s240_s9  ;;  %p244_p6 = scmp.lt.u32.totalorder %s240_s9, %s347_s3 }
 0x102   :  { %p246_p7 = pnand %p244_p6, %p241_p5 }
 0x104   :  { %249 = shalt.err (!%p246_p7)
}
 0x105   :  { %s253_s14 = smov 128   ;;  %s254_s15 = smov 8  }
 0x106   :  { %157 = dma.vmem_to_hbm [thread:$0]  %s152_s7, 256, %s347_s3, [#allocation3], %s253_s14, %s253_s14, %s254_s15  }
 0x107   :  { %250 = dma.done.wait [#allocation3], 256  }
 0x108   :  { %251 = vsyncadd [#allocation3], 4294967040 }
 0x109   :  { %161 = vsyncpa [#allocation3], 1 }

</bundles_post_ra>
